<compile_context>
chip_gen: v7x
topology: tpu7x:2x2x1
jax: 0.10.0
libtpu: 0.0.40
codegen_flags: <defaults>
</compile_context>

<pallas_src>
import functools

import jax
import jax.numpy as jnp
import numpy as np
from jax import lax
from jax.experimental import pallas as pl
from jax.experimental.pallas import tpu as pltpu


def _round_up(x, m):
    return ((x + m - 1) // m) * m


def _vmem_capacity_bytes():
    """Per-core physical VMEM, generation-aware, with a conservative fallback."""
    try:
        info = pltpu.get_tpu_info()
        cap = int(getattr(info, "vmem_capacity_bytes", 0) or 0)
        if cap > 0:
            return cap
    except Exception:
        pass
    return 64 << 20  # v7x per-TC VMEM (smallest of current generations)


def _coral_kernel(s_ref, t_ref, out_ref, g_ref, ss_ref, st_ref, *,
                  ns, nt, d, block_rows, nbs, nbt, nblocks,
                  mask_s, mask_t, use_bf16_matmul, is_sqrt):
    k = pl.program_id(0)
    f32 = jnp.float32
    # X^T X as a contraction over the row axis (native transposed-LHS matmul,
    # no explicit XLU tile transpose).
    dims = (((0,), (0,)), ((), ()))

    # ---- init accumulators --------------------------------------------------
    def init():
        g_ref[...] = jnp.zeros_like(g_ref)
        ss_ref[...] = jnp.zeros_like(ss_ref)
        st_ref[...] = jnp.zeros_like(st_ref)

    if nblocks == 1:
        init()
    else:
        pl.when(k == 0)(init)

    # ---- per-block contribution --------------------------------------------
    def masked_tile(ref, n_rows, need_mask):
        x = ref[...]
        if need_mask:
            # Zero rows past the valid extent of this block (partial tail block
            # or block larger than the matrix); zero rows are inert downstream.
            rows_left = n_rows - k * block_rows
            row_id = lax.broadcasted_iota(jnp.int32, x.shape, 0)
            x = jnp.where(row_id < rows_left, x, jnp.zeros_like(x))
        return x

    def contrib(ref, n_rows, need_mask, sum_ref, inv_nm1):
        x = masked_tile(ref, n_rows, need_mask)
        # Widening column-sum: no materialized f32 up-cast copy of the tile.
        sum_ref[...] += jnp.sum(x, axis=0, keepdims=True, dtype=f32)
        x_mm = x
        if use_bf16_matmul and x.dtype == jnp.float32:
            x_mm = x.astype(jnp.bfloat16)  # bf16-native MXU; acc stays f32
        g = lax.dot_general(x_mm, x_mm, dims, preferred_element_type=f32)
        return g * inv_nm1

    inv_ns1 = 1.0 / (ns - 1)
    inv_nt1 = 1.0 / (nt - 1)

    if nbs == nblocks and nbt == nblocks:
        # Common case (ns ~ nt): one RMW of the single difference-Gram per step,
        # no scf.if in the hot body.
        g_ref[...] += (contrib(s_ref, ns, mask_s, ss_ref, inv_ns1)
                       - contrib(t_ref, nt, mask_t, st_ref, inv_nt1))
    else:
        if nbs == nblocks:
            g_ref[...] += contrib(s_ref, ns, mask_s, ss_ref, inv_ns1)
        else:
            @pl.when(k < nbs)
            def _():
                g_ref[...] += contrib(s_ref, ns, mask_s, ss_ref, inv_ns1)

        if nbt == nblocks:
            g_ref[...] -= contrib(t_ref, nt, mask_t, st_ref, inv_nt1)
        else:
            @pl.when(k < nbt)
            def _():
                g_ref[...] -= contrib(t_ref, nt, mask_t, st_ref, inv_nt1)

    # ---- finalize on last grid step -----------------------------------------
    def finalize():
        sum_s = ss_ref[...]                       # (1, d) f32
        sum_t = st_ref[...]
        # Rank-1 mean corrections as MXU outer products (no lane->sublane
        # relayout of the sum vectors).
        outer_s = lax.dot_general(sum_s, sum_s, dims, preferred_element_type=f32)
        outer_t = lax.dot_general(sum_t, sum_t, dims, preferred_element_type=f32)
        diff = (g_ref[...]
                - outer_s * (1.0 / (ns * (ns - 1.0)))
                + outer_t * (1.0 / (nt * (nt - 1.0))))
        loss = jnp.sum(diff * diff)
        if is_sqrt:
            loss = jnp.sqrt(loss)
        loss = loss / (4.0 * d * d)               # normalize with ORIGINAL d
        out_ref[...] = loss.reshape(1, 1)

    if nblocks == 1:
        finalize()
    else:
        pl.when(k == nblocks - 1)(finalize)


def coral_loss2(source, target, *, is_sqrt=False, block_rows=None,
                use_bf16_matmul=False):
    """Pallas implementation of CoralLoss2.forward(source, target) -> scalar."""
    ns, d = source.shape
    nt, d2 = target.shape
    assert d == d2, "source/target feature dims must match"
    assert ns > 1 and nt > 1, "CORAL needs ns > 1 and nt > 1 (division by n-1)"

    d_pad = _round_up(d, 128)                     # lane-padded footprint in VMEM
    itemsize = max(jnp.dtype(source.dtype).itemsize,
                   jnp.dtype(target.dtype).itemsize)

    # ---- generation-aware VMEM budget (~100 MiB usable on v5e/v6e, ~56 on v7x)
    cap = _vmem_capacity_bytes()
    usable = min(cap - (8 << 20), 100 << 20)

    scratch_bytes = d_pad * d_pad * 4 + 2 * 8 * d_pad * 4   # diff-Gram + 2 col-sums
    epilogue_bytes = 2 * d_pad * d_pad * 4                  # outer-product temps

    if block_rows is None:
        budget = usable - scratch_bytes - epilogue_bytes - (2 << 20)
        if budget <= 0:
            block_rows = 128
        else:
            # 2 inputs x 2 pipeline buffers x block_rows x d_pad x itemsize
            block_rows = budget // (4 * d_pad * itemsize)
            block_rows = int(min(32768, max(8, block_rows)))
    block_rows = max(8, (int(block_rows) // 8) * 8)
    block_rows = min(block_rows, _round_up(max(ns, nt), 8))

    nbs = pl.cdiv(ns, block_rows)
    nbt = pl.cdiv(nt, block_rows)
    nblocks = max(nbs, nbt)

    # Clamp the shorter matrix's block index so no out-of-bounds DMA happens for
    # grid steps past its own block count (its accumulation is pl.when-guarded).
    def _idx_map(nb):
        if nb == nblocks:
            return lambda k: (k, 0)
        last = nb - 1
        return lambda k: (jnp.minimum(k, last), 0)

    kernel = functools.partial(
        _coral_kernel, ns=ns, nt=nt, d=d, block_rows=block_rows,
        nbs=nbs, nbt=nbt, nblocks=nblocks,
        mask_s=(ns % block_rows != 0), mask_t=(nt % block_rows != 0),
        use_bf16_matmul=use_bf16_matmul, is_sqrt=is_sqrt)

    # vmem_limit: io_bytes already includes the double-buffer factor — do not
    # multiply it again; keep explicit headroom below physical VMEM.
    io_bytes = 2 * 2 * block_rows * d_pad * itemsize
    vmem_limit = io_bytes + scratch_bytes + epilogue_bytes + (2 << 20)
    vmem_limit = int(min(max(vmem_limit, 16 << 20), usable))

    out = pl.pallas_call(
        kernel,
        out_shape=jax.ShapeDtypeStruct((1, 1), jnp.float32),
        grid_spec=pltpu.PrefetchScalarGridSpec(
            num_scalar_prefetch=0,
            grid=(nblocks,),
            in_specs=[
                pl.BlockSpec((block_rows, d), _idx_map(nbs)),
                pl.BlockSpec((block_rows, d), _idx_map(nbt)),
            ],
            out_specs=pl.BlockSpec((1, 1), lambda k: (0, 0)),
            scratch_shapes=[
                pltpu.VMEM((d, d), jnp.float32),   # difference-Gram accumulator
                pltpu.VMEM((1, d), jnp.float32),   # col-sum(source)
                pltpu.VMEM((1, d), jnp.float32),   # col-sum(target)
            ],
        ),
        compiler_params=pltpu.CompilerParams(
            dimension_semantics=("arbitrary",),
            vmem_limit_bytes=vmem_limit),
    )(source, target)
    return out[0, 0]


def _coral_ref(source, target, is_sqrt=False):
    """Plain-JAX reference mirroring the PyTorch module exactly."""
    source = source.astype(jnp.float32)
    target = target.astype(jnp.float32)
    d = source.shape[1]
    ns, nt = source.shape[0], target.shape[0]
    tmp_s = jnp.ones((1, ns), jnp.float32) @ source
    cs = (source.T @ source - tmp_s.T @ tmp_s / ns) / (ns - 1)
    tmp_t = jnp.ones((1, nt), jnp.float32) @ target
    ct = (target.T @ target - tmp_t.T @ tmp_t / nt) / (nt - 1)
    loss = jnp.sum((cs - ct) ** 2)
    if is_sqrt:
        loss = jnp.sqrt(loss)
    return loss / (4 * d * d)


if __name__ == "__main__":
    key = jax.random.PRNGKey(0)
    k_s, k_t, k_s2, k_t2 = jax.random.split(key, 4)

    # --- small canonical shapes (exercises block > shorter-matrix rows + mask)
    ns, nt, d = 16, 8, 32
    source = jax.random.normal(k_s, (ns, d), dtype=jnp.float32)
    target = 0.5 * jax.random.normal(k_t, (nt, d), dtype=jnp.float32) + 0.1

    out = jax.block_until_ready(coral_loss2(source, target, is_sqrt=False))
    ref = jax.block_until_ready(_coral_ref(source, target, is_sqrt=False))
    np.testing.assert_allclose(np.asarray(out), np.asarray(ref),
                               rtol=1e-5, atol=1e-6)

    # is_sqrt=True path
    out_sqrt = jax.block_until_ready(coral_loss2(source, target, is_sqrt=True))
    ref_sqrt = jax.block_until_ready(_coral_ref(source, target, is_sqrt=True))
    np.testing.assert_allclose(np.asarray(out_sqrt), np.asarray(ref_sqrt),
                               rtol=1e-5, atol=1e-6)

    # --- unbalanced ns/nt with a forced small block: multi-block grid, clamped
    #     index_map, pl.when accumulation guard, and in-kernel tail masking.
    ns2, nt2 = 40, 24
    source2 = jax.random.normal(k_s2, (ns2, d), dtype=jnp.float32)
    target2 = 0.7 * jax.random.normal(k_t2, (nt2, d), dtype=jnp.float32) - 0.2
    out2 = jax.block_until_ready(
        coral_loss2(source2, target2, is_sqrt=False, block_rows=16))
    ref2 = jax.block_until_ready(_coral_ref(source2, target2, is_sqrt=False))
    np.testing.assert_allclose(np.asarray(out2), np.asarray(ref2),
                               rtol=1e-5, atol=1e-6)

    # --- optional bf16-on-MXU path (reduced precision; loose tolerance).
    out_bf16 = jax.block_until_ready(
        coral_loss2(source, target, is_sqrt=False, use_bf16_matmul=True))
    np.testing.assert_allclose(np.asarray(out_bf16), np.asarray(ref),
                               rtol=1e-1, atol=1e-3)

    print("KERNEL_OK")
</pallas_src>

<mosaic_0001>
module attributes {stable_mosaic.version = 11 : i64} {
  func.func @_coral_kernel(%arg0: i32, %arg1: memref<16x32xf32, #tpu.memory_space<vmem>>, %arg2: memref<16x32xf32, #tpu.memory_space<vmem>>, %arg3: memref<1x1xf32, #tpu.memory_space<vmem>>, %arg4: memref<32x32xf32, #tpu.memory_space<vmem>>, %arg5: memref<1x32xf32, #tpu.memory_space<vmem>>, %arg6: memref<1x32xf32, #tpu.memory_space<vmem>>) attributes {dimension_semantics = [#tpu.dimension_semantics<arbitrary>], iteration_bounds = array<i64: 1>, scalar_prefetch = 0 : i64, scratch_operands = 3 : i64, tpu.core_type = #tpu.core_type<tc>, window_params = [{transform_indices = @transform_0, window_bounds = array<i64: 16, 32>}, {transform_indices = @transform_1, window_bounds = array<i64: 16, 32>}, {pipeline_mode = #tpu.pipeline_mode<synchronous>, transform_indices = @transform_2, window_bounds = array<i64: 1, 1>}]} {
    %cst = arith.constant 0.000000e+00 : f32
    %0 = vector.broadcast %cst : f32 to vector<32x32xf32>
    %c0 = arith.constant 0 : index
    %c0_0 = arith.constant 0 : index
    %1 = vector.load %arg4[%c0, %c0_0] : memref<32x32xf32, #tpu.memory_space<vmem>>, vector<32x32xf32>
    tpu.vector_store %arg4[%c0, %c0_0], %0 {strides = array<i32>} : memref<32x32xf32, #tpu.memory_space<vmem>>, vector<32x32xf32>,
    %cst_1 = arith.constant 0.000000e+00 : f32
    %2 = vector.broadcast %cst_1 : f32 to vector<1x32xf32>
    %c0_2 = arith.constant 0 : index
    %c0_3 = arith.constant 0 : index
    %3 = vector.load %arg5[%c0_2, %c0_3] : memref<1x32xf32, #tpu.memory_space<vmem>>, vector<1x32xf32>
    tpu.vector_store %arg5[%c0_2, %c0_3], %2 {strides = array<i32>} : memref<1x32xf32, #tpu.memory_space<vmem>>, vector<1x32xf32>,
    %cst_4 = arith.constant 0.000000e+00 : f32
    %4 = vector.broadcast %cst_4 : f32 to vector<1x32xf32>
    %c0_5 = arith.constant 0 : index
    %c0_6 = arith.constant 0 : index
    %5 = vector.load %arg6[%c0_5, %c0_6] : memref<1x32xf32, #tpu.memory_space<vmem>>, vector<1x32xf32>
    tpu.vector_store %arg6[%c0_5, %c0_6], %4 {strides = array<i32>} : memref<1x32xf32, #tpu.memory_space<vmem>>, vector<1x32xf32>,
    %c0_7 = arith.constant 0 : index
    %c0_8 = arith.constant 0 : index
    %6 = vector.load %arg4[%c0_7, %c0_8] : memref<32x32xf32, #tpu.memory_space<vmem>>, vector<32x32xf32>
    %c0_9 = arith.constant 0 : index
    %c0_10 = arith.constant 0 : index
    %7 = vector.load %arg1[%c0_9, %c0_10] : memref<16x32xf32, #tpu.memory_space<vmem>>, vector<16x32xf32>
    %c0_11 = arith.constant 0 : index
    %c0_12 = arith.constant 0 : index
    %8 = vector.load %arg5[%c0_11, %c0_12] : memref<1x32xf32, #tpu.memory_space<vmem>>, vector<1x32xf32>
    %cst_13 = arith.constant dense<0.000000e+00> : vector<32xf32>
    %9 = vector.multi_reduction <add>, %7, %cst_13 [0] : vector<16x32xf32> to vector<32xf32>
    %10 = vector.shape_cast %9 : vector<32xf32> to vector<1x32xf32>
    %11 = arith.addf %8, %10 : vector<1x32xf32>
    %c0_14 = arith.constant 0 : index
    %c0_15 = arith.constant 0 : index
    %12 = vector.load %arg5[%c0_14, %c0_15] : memref<1x32xf32, #tpu.memory_space<vmem>>, vector<1x32xf32>
    tpu.vector_store %arg5[%c0_14, %c0_15], %11 {strides = array<i32>} : memref<1x32xf32, #tpu.memory_space<vmem>>, vector<1x32xf32>,
    %cst_16 = arith.constant dense<0.000000e+00> : vector<32x32xf32>
    %13 = tpu.matmul %7, %7, %cst_16 {dimension_numbers = #tpu.dot_dimension_numbers<[0], [0], [1], [1], [0, 1, 1, 1], [], []>} : vector<16x32xf32>, vector<16x32xf32>, vector<32x32xf32> -> vector<32x32xf32>
    %cst_17 = arith.constant 0.0666666701 : f32
    %14 = vector.broadcast %cst_17 : f32 to vector<32x32xf32>
    %15 = arith.mulf %13, %14 : vector<32x32xf32>
    %c0_18 = arith.constant 0 : index
    %c0_19 = arith.constant 0 : index
    %16 = vector.load %arg2[%c0_18, %c0_19] : memref<16x32xf32, #tpu.memory_space<vmem>>, vector<16x32xf32>
    %c16_i32 = arith.constant 16 : i32
    %17 = arith.muli %arg0, %c16_i32 : i32
    %c8_i32 = arith.constant 8 : i32
    %18 = arith.subi %c8_i32, %17 : i32
    %19 = tpu.iota {dimensions = array<i32: 0>} : vector<16x32xi32>
    %20 = vector.broadcast %18 : i32 to vector<16x32xi32>
    %21 = arith.cmpi slt, %19, %20 : vector<16x32xi32>
    %cst_20 = arith.constant 0.000000e+00 : f32
    %22 = vector.broadcast %cst_20 : f32 to vector<16x32xf32>
    %23 = arith.select %21, %16, %22 : vector<16x32xi1>, vector<16x32xf32>
    %c0_21 = arith.constant 0 : index
    %c0_22 = arith.constant 0 : index
    %24 = vector.load %arg6[%c0_21, %c0_22] : memref<1x32xf32, #tpu.memory_space<vmem>>, vector<1x32xf32>
    %cst_23 = arith.constant dense<0.000000e+00> : vector<32xf32>
    %25 = vector.multi_reduction <add>, %23, %cst_23 [0] : vector<16x32xf32> to vector<32xf32>
    %26 = vector.shape_cast %25 : vector<32xf32> to vector<1x32xf32>
    %27 = arith.addf %24, %26 : vector<1x32xf32>
    %c0_24 = arith.constant 0 : index
    %c0_25 = arith.constant 0 : index
    %28 = vector.load %arg6[%c0_24, %c0_25] : memref<1x32xf32, #tpu.memory_space<vmem>>, vector<1x32xf32>
    tpu.vector_store %arg6[%c0_24, %c0_25], %27 {strides = array<i32>} : memref<1x32xf32, #tpu.memory_space<vmem>>, vector<1x32xf32>,
    %cst_26 = arith.constant dense<0.000000e+00> : vector<32x32xf32>
    %29 = tpu.matmul %23, %23, %cst_26 {dimension_numbers = #tpu.dot_dimension_numbers<[0], [0], [1], [1], [0, 1, 1, 1], [], []>} : vector<16x32xf32>, vector<16x32xf32>, vector<32x32xf32> -> vector<32x32xf32>
    %cst_27 = arith.constant 0.142857149 : f32
    %30 = vector.broadcast %cst_27 : f32 to vector<32x32xf32>
    %31 = arith.mulf %29, %30 : vector<32x32xf32>
    %32 = arith.subf %15, %31 : vector<32x32xf32>
    %33 = arith.addf %6, %32 : vector<32x32xf32>
    %c0_28 = arith.constant 0 : index
    %c0_29 = arith.constant 0 : index
    %34 = vector.load %arg4[%c0_28, %c0_29] : memref<32x32xf32, #tpu.memory_space<vmem>>, vector<32x32xf32>
    tpu.vector_store %arg4[%c0_28, %c0_29], %33 {strides = array<i32>} : memref<32x32xf32, #tpu.memory_space<vmem>>, vector<32x32xf32>,
    %c0_30 = arith.constant 0 : index
    %c0_31 = arith.constant 0 : index
    %35 = vector.load %arg5[%c0_30, %c0_31] : memref<1x32xf32, #tpu.memory_space<vmem>>, vector<1x32xf32>
    %c0_32 = arith.constant 0 : index
    %c0_33 = arith.constant 0 : index
    %36 = vector.load %arg6[%c0_32, %c0_33] : memref<1x32xf32, #tpu.memory_space<vmem>>, vector<1x32xf32>
    %cst_34 = arith.constant dense<0.000000e+00> : vector<32x32xf32>
    %37 = tpu.matmul %35, %35, %cst_34 {dimension_numbers = #tpu.dot_dimension_numbers<[0], [0], [1], [1], [0, 1, 1, 1], [], []>} : vector<1x32xf32>, vector<1x32xf32>, vector<32x32xf32> -> vector<32x32xf32>
    %cst_35 = arith.constant dense<0.000000e+00> : vector<32x32xf32>
    %38 = tpu.matmul %36, %36, %cst_35 {dimension_numbers = #tpu.dot_dimension_numbers<[0], [0], [1], [1], [0, 1, 1, 1], [], []>} : vector<1x32xf32>, vector<1x32xf32>, vector<32x32xf32> -> vector<32x32xf32>
    %c0_36 = arith.constant 0 : index
    %c0_37 = arith.constant 0 : index
    %39 = vector.load %arg4[%c0_36, %c0_37] : memref<32x32xf32, #tpu.memory_space<vmem>>, vector<32x32xf32>
    %cst_38 = arith.constant 0.00416666688 : f32
    %40 = vector.broadcast %cst_38 : f32 to vector<32x32xf32>
    %41 = arith.mulf %37, %40 : vector<32x32xf32>
    %42 = arith.subf %39, %41 : vector<32x32xf32>
    %cst_39 = arith.constant 0.0178571437 : f32
    %43 = vector.broadcast %cst_39 : f32 to vector<32x32xf32>
    %44 = arith.mulf %38, %43 : vector<32x32xf32>
    %45 = arith.addf %42, %44 : vector<32x32xf32>
    %46 = arith.mulf %45, %45 : vector<32x32xf32>
    %47 = vector.shape_cast %46 : vector<32x32xf32> to vector<1x32x32xf32>
    %cst_40 = arith.constant dense<0.000000e+00> : vector<1xf32>
    %48 = vector.multi_reduction <add>, %47, %cst_40 [1, 2] : vector<1x32x32xf32> to vector<1xf32>
    %49 = vector.shape_cast %48 : vector<1xf32> to vector<1x1x1xf32>
    %50 = vector.extract %49[0, 0, 0] : f32 from vector<1x1x1xf32>
    %cst_41 = arith.constant 4.096000e+03 : f32
    %51 = arith.divf %50, %cst_41 : f32
    %52 = vector.broadcast %51 : f32 to vector<1x1xf32>
    %c0_42 = arith.constant 0 : index
    %c0_43 = arith.constant 0 : index
    %53 = vector.load %arg3[%c0_42, %c0_43] : memref<1x1xf32, #tpu.memory_space<vmem>>, vector<1x1xf32>
    tpu.vector_store %arg3[%c0_42, %c0_43], %52 {strides = array<i32>} : memref<1x1xf32, #tpu.memory_space<vmem>>, vector<1x1xf32>,
    return
  }
  func.func @transform_0(%arg0: i32) -> (i32, i32) {
    %c0_i32 = arith.constant 0 : i32
    %c0_i32_0 = arith.constant 0 : i32
    return %arg0, %c0_i32 : i32, i32
  }
  func.func @transform_1(%arg0: i32) -> (i32, i32) {
    %c0_i32 = arith.constant 0 : i32
    %c0_i32_0 = arith.constant 0 : i32
    return %arg0, %c0_i32 : i32, i32
  }
  func.func @transform_2(%arg0: i32) -> (i32, i32) {
    %c0_i32 = arith.constant 0 : i32
    %c0_i32_0 = arith.constant 0 : i32
    %c0_i32_1 = arith.constant 0 : i32
    return %c0_i32, %c0_i32_0 : i32, i32
  }
}

</mosaic_0001>

<bundles_post_ra>
// kernel: tpu_custom_call.1
= control target key start
LH: loop header
LB: loop body
LE: loop exit
PB: predicated region body
PF: predicated region fallthrough
CT: control target
= control target key end

     0   :  { %7 = vsyncpa [#allocation6], 0  ;;  %s940_s0 = inlined_call_operand.hbm [shape: f32[16,32], index: 0, kind: input, shape index: {}]   ;;  %s941_s1 = inlined_call_operand.hbm [shape: f32[8,32], index: 1, kind: input, shape index: {}]   ;;  %s942_s2 = inlined_call_operand.hbm [shape: f32[1,1], index: 2, kind: output, shape index: {}]  }
   0x1   :  { %8 = vsyncpa [#allocation9], 0 }
   0x2   :  { %9 = vsyncpa [#allocation7], 0  ;;  %s856_s9 = smov [#allocation5]   ;;  %s784_s13 = scalar_lea.hbm %s940_s0, 256 }
   0x3   :  { %s15_s10 = sshll.u32 %s856_s9, 4  ;;  %p785_p0 = scmp.ne.s32.totalorder %s940_s0, %s784_s13  ;;  %s16_s10 = int_to_ptr.vmem [resolvable:$true] %s15_s10 }
   0x4   :  { %p788_p1 = scmp.lt.u32.totalorder %s784_s13, %s940_s0 }
   0x6   :  { %p790_p2 = pnand %p788_p1, %p785_p0 }
   0x8   :  { %793 = shalt.err (!%p790_p2)
}
   0x9   :  { %s794_s18 = scalar_lea.vmem %s16_s10, 256  ;;  %p799_p4 = scmp.lt.s32.totalorder %s16_s10, %s16_s10 }
   0xa   :  { %p795_p3 = scmp.ne.s32.totalorder %s16_s10, %s794_s18  ;;  %p800_p5 = scmp.lt.s32.totalorder %s794_s18, %s794_s18 }
   0xc   :  { %p801_p6 = por %p800_p5, %p799_p4 }
   0xe   :  { %p802_p7 = pnand %p801_p6, %p795_p3 }
  0x10   :  { %805 = shalt.err (!%p802_p7)
}
  0x11   :  { %s857_s19 = smov 128   ;;  %s858_s20 = smov 8  }
  0x12   :  { %21 = dma.hbm_to_vmem [thread:$0]  %s940_s0, 256, %s16_s10, [#allocation6], %s857_s19, %s857_s19, %s858_s20  }
  0x13   :  { %26 = vsyncadd [#allocation9], 128  ;;  %s859_s23 = smov [#allocation8]   ;;  %s806_s27 = scalar_lea.hbm %s941_s1, 128 }
  0x14   :  { %s27_s24 = sshll.u32 %s859_s23, 4  ;;  %p807_p8 = scmp.ne.s32.totalorder %s941_s1, %s806_s27  ;;  %s28_s24 = int_to_ptr.vmem [resolvable:$true] %s27_s24 }
  0x15   :  { %p810_p9 = scmp.lt.u32.totalorder %s806_s27, %s941_s1 }
  0x17   :  { %p812_p10 = pnand %p810_p9, %p807_p8 }
  0x19   :  { %815 = shalt.err (!%p812_p10)
}
  0x1a   :  { %s816_s4 = scalar_lea.vmem %s28_s24, 128  ;;  %s820_s0 = scalar_lea.vmem %s28_s24, 256 }
  0x1b   :  { %p817_p11 = scmp.ne.s32.totalorder %s28_s24, %s816_s4  ;;  %p821_p12 = scmp.lt.s32.totalorder %s28_s24, %s28_s24 }
  0x1c   :  { %p822_p13 = scmp.lt.s32.totalorder %s820_s0, %s816_s4 }
  0x1e   :  { %p823_p0 = por %p822_p13, %p821_p12 }
  0x20   :  { %p824_p1 = pnand %p823_p0, %p817_p11 }
  0x22   :  { %827 = shalt.err (!%p824_p1)
}
  0x23   :  { %33 = dma.hbm_to_vmem [thread:$0]  %s941_s1, 128, %s28_s24, [#allocation9], %s857_s19, %s857_s19, %s858_s20  }
  0x24   :  { %850 = dma.done.wait [#allocation6], 256  }
  0x25   :  { %851 = vsyncadd [#allocation6], 4294967040 }
  0x26   :  { %852 = dma.done.wait [#allocation9], 256  }
  0x27   :  { %853 = vsyncadd [#allocation9], 4294967040  ;;  %vm40_vm0 = vcmask 261120   ;;  %vm45_vm1 = vcmask 253952   ;;  %v860_v0 = vmov 0.0   ;;  %v200_v1 = vld [vmem:[#allocation8] sm:$0xff] }
  0x28   :  { %47 = vst.msk [vmem:[#allocation4] sm:$0x1] %vm45_vm1, %v860_v0  ;;  %46 = vst.msk [vmem:[#allocation3] sm:$0x1] %vm45_vm1, %v860_v0  ;;  %v52_v2 = vld [vmem:[#allocation5] sm:$0xff]  ;;  %v53_v3 = vld [vmem:[#allocation5 + $0x8] sm:$0xff]  ;;  %748 = vmatprep.subr.mxu1 %v200_v1 }
  0x29   :  { %41 = vst.msk [vmem:[#allocation2] sm:$0xff] %vm40_vm0, %v860_v0  ;;  %42 = vst.msk [vmem:[#allocation2 + $0x8] sm:$0xff] %vm40_vm0, %v860_v0  ;;  %224 = vxpose.xlu1.b32.start.end [1/1] (short) (narrow) %v200_v1, 32  ;;  %v213_v4 = vsel %vm40_vm0, %v200_v1, 0.0  ;;  %66 = vxpose.xlu0.b32.start [1/2] (short) (narrow) %v52_v2, 32  ;;  %v55_v5 = vsel %vm40_vm0, %v52_v2, 0.0  ;;  %v772_v6 = vpack.c.bf16 %v53_v3, %v52_v2 }
  0x2a   :  { %43 = vst.msk [vmem:[#allocation2 + $0x10] sm:$0xff] %vm40_vm0, %v860_v0  ;;  %44 = vst.msk [vmem:[#allocation2 + $0x18] sm:$0xff] %vm40_vm0, %v860_v0  ;;  %v216_v7 = vrot.slane %v213_v4, 4  ;;  %v56_v8 = vsel %vm40_vm0, %v53_v3, 0.0  ;;  %749 = vmatpush3.msra.mxu1 %v200_v1  ;;  %vm416_vm2 = vcmask 1040384   ;;  %vm98_vm3 = vcmask 130048  }
  0x2b   :  { %v57_v9 = vadd.f32 %v56_v8, %v55_v5  ;;  %773 = vmatprep.subr.bf16.mxu0 %v772_v6  ;;  %vm403_vm4 = vcmask 7168   ;;  %s861_s1 = smov [#allocation10]   ;;  %vm681_vm5 = vcmask 0  }
  0x2c   :  { %v217_v10 = vadd.f32 %v216_v7, %v213_v4  ;;  %775 = vmatpush3.bf16.msra.mxu0 %v772_v6  ;;  %s689_s7 = sshll.u32 %s861_s1, 4  ;;  %s690_s7 = int_to_ptr.vmem [resolvable:$true] %s689_s7 }
  0x2d   :  { %67 = vxpose.xlu0.b32.end [2/2] (short) (narrow) %v53_v3, 32  ;;  %v58_v11 = vrot.slane %v57_v9, 4  ;;  %s828_s10 = scalar_lea.vmem %s690_s7, 16  ;;  %s832_s11 = scalar_lea.vmem %s690_s7, 32 }
  0x2e   :  { %v218_v12 = vrot.slane %v217_v10, 2  ;;  %p829_p2 = scmp.ne.s32.totalorder %s690_s7, %s828_s10  ;;  %p833_p3 = scmp.lt.s32.totalorder %s690_s7, %s690_s7 }
  0x2f   :  { %v59_v13 = vadd.f32 %v58_v11, %v57_v9  ;;  %v212_v17 = vld [vmem:[#allocation4] sm:$0x1]  ;;  %v54_v22 = vld [vmem:[#allocation3] sm:$0x1]  ;;  %p834_p4 = scmp.lt.s32.totalorder %s832_s11, %s828_s10 }
  0x30   :  { %v219_v14 = vadd.f32 %v218_v12, %v217_v10  ;;  %v49_v49 = vld [vmem:[#allocation2 + $0x8] sm:$0xff]  ;;  %v48_v53 = vld [vmem:[#allocation2] sm:$0xff] }
  0x31   :  { %v60_v15 = vrot.slane %v59_v13, 2  ;;  %v51_v63 = vld [vmem:[#allocation2 + $0x18] sm:$0xff]  ;;  %v50_v3 = vld [vmem:[#allocation2 + $0x10] sm:$0xff]  ;;  %p835_p5 = por %p834_p4, %p833_p3 }
  0x32   :  { %v220_v16 = vrot.slane %v219_v14, 1 }
  0x33   :  { %v61_v18 = vadd.f32 %v60_v15, %v59_v13  ;;  %p836_p6 = pnand %p835_p5, %p829_p2 }
  0x34   :  { %v221_v19 = vadd.f32 %v220_v16, %v219_v14 }
  0x35   :  { %v62_v20 = vrot.slane %v61_v18, 1 }
  0x36   :  { %v222_v21 = vadd.f32 %v221_v19, %v212_v17 }
  0x37   :  { %v63_v23 = vadd.f32 %v62_v20, %v61_v18 }
  0x38   :  { %223 = vst.msk [vmem:[#allocation4] sm:$0x1] %vm45_vm1, %v222_v21 }
  0x39   :  { %v64_v24 = vadd.f32 %v63_v23, %v54_v22 }
  0x3b   :  { %65 = vst.msk [vmem:[#allocation3] sm:$0x1] %vm45_vm1, %v64_v24 }
  0x3f   :  { %v370_v25 = vld [vmem:[#allocation4] sm:$0x1] }
  0x40   :  { %505 = vxpose.xlu0.b32.start.end [1/1] (short) (narrow) %v370_v25, 32  ;;  %764 = vmatprep.subr.msk.mxu0 %vm416_vm2, %v370_v25 }
  0x42   :  { %v369_v26 = vld [vmem:[#allocation3] sm:$0x1] }
  0x43   :  { %371 = vxpose.xlu1.b32.start.end [1/1] (short) (narrow) %v369_v26, 32  ;;  %756 = vmatprep.subr.msk.mxu1 %vm416_vm2, %v369_v26 }
  0xa9   :  { %v240_v27 = vpop.trf.xlu1  ;;  %v82_v28 = vpop.trf.xlu0 }
  0xaa   :  { %750 = vmatprep.mubr.msk.f32.mxu1 %vm98_vm3, %v240_v27  ;;  %742 = vmatprep.mubr.msk.f32.mxu0 %vm98_vm3, %v82_v28 }
  0xad   :  { %v241_v29 = vpop.trf.xlu1  ;;  %v83_v30 = vpop.trf.xlu0 }
  0xae   :  { %743 = vmatmul.mubr.msk.f32.vlgmr.msra.gmra.mrb[0].mxu0 %vm98_vm3, %v83_v30  ;;  %751 = vmatmul.mubr.msk.f32.vlgmr.msra.gmra.mrb[0].mxu1 %vm98_vm3, %v241_v29 }
  0xaf   :  { %757 = vmatpush3.msk.msra.mxu1 %vm416_vm2, %v369_v26  ;;  %765 = vmatpush3.msk.msra.mxu0 %vm416_vm2, %v370_v25 }
  0xb1   :  { %v242_v31 = vpop.trf.xlu1  ;;  %v84_v32 = vpop.trf.xlu0 }
  0xb2   :  { %753 = vmatprep.mubr.msk.f32.mxu1 %vm98_vm3, %v242_v31  ;;  %745 = vmatprep.mubr.msk.f32.mxu0 %vm98_vm3, %v84_v32 }
  0xb5   :  { %v243_v33 = vpop.trf.xlu1  ;;  %v85_v34 = vpop.trf.xlu0 }
  0xb6   :  { %746 = vmatmul.mubr.msk.f32.gmra.mrb[2].mxu0 %vm98_vm3, %v85_v34  ;;  %754 = vmatmul.mubr.msk.f32.gmra.mrb[2].mxu1 %vm98_vm3, %v243_v33 }
  0xc0   :  { %v521_v35 = vpop.trf.xlu0 }
  0xc1   :  { %766 = vmatprep.mubr.msk.f32.mxu0 %vm403_vm4, %v521_v35 }
  0xc3   :  { %v387_v36 = vpop.trf.xlu1 }
  0xc4   :  { %758 = vmatprep.mubr.msk.f32.mxu1 %vm403_vm4, %v387_v36  ;;  %v522_v37 = vpop.trf.xlu0 }
  0xc5   :  { %767 = vmatmul.mubr.msk.f32.vlgmr.msra.gmra.mrb[4].mxu0 %vm403_vm4, %v522_v37 }
  0xc7   :  { %v388_v38 = vpop.trf.xlu1 }
  0xc8   :  { %759 = vmatmul.mubr.msk.f32.vlgmr.msra.gmra.mrb[4].mxu1 %vm403_vm4, %v388_v38  ;;  %v523_v39 = vpop.trf.xlu0 }
  0xc9   :  { %769 = vmatprep.mubr.msk.f32.mxu0 %vm403_vm4, %v523_v39 }
  0xcb   :  { %v389_v40 = vpop.trf.xlu1 }
  0xcc   :  { %761 = vmatprep.mubr.msk.f32.mxu1 %vm403_vm4, %v389_v40  ;;  %v524_v41 = vpop.trf.xlu0 }
  0xcd   :  { %770 = vmatmul.mubr.msk.f32.gmra.mrb[6].mxu0 %vm403_vm4, %v524_v41 }
  0xcf   :  { %v390_v42 = vpop.trf.xlu1 }
  0xd0   :  { %762 = vmatmul.mubr.msk.f32.gmra.mrb[6].mxu1 %vm403_vm4, %v390_v42 }
 0x181   :  { %v744_v43 = vpop.f32.mrb[0].mxu0  ;;  %v752_v44 = vpop.f32.mrb[0].mxu1 }
 0x182   :  { %v197_v45 = vmul.f32 0.06666667, %v744_v43  ;;  %v354_v46 = vmul.f32 0.14285715, %v752_v44  ;;  %v177_v47 = vpop.f32.mrb[1].mxu0  ;;  %v334_v48 = vpop.f32.mrb[1].mxu1 }
 0x183   :  { %v196_v50 = vmul.f32 0.06666667, %v177_v47  ;;  %v353_v51 = vmul.f32 0.14285715, %v334_v48 }
 0x184   :  { %v358_v52 = vsub.f32 %v197_v45, %v354_v46 }
 0x185   :  { %v357_v54 = vsub.f32 %v196_v50, %v353_v51 }
 0x186   :  { %v362_v55 = vadd.f32 %v358_v52, %v49_v49 }
 0x187   :  { %v361_v56 = vadd.f32 %v357_v54, %v48_v53 }
 0x188   :  { %366 = vst.msk [vmem:[#allocation2 + $0x8] sm:$0xff] %vm40_vm0, %v362_v55 }
 0x189   :  { %365 = vst.msk [vmem:[#allocation2] sm:$0xff] %vm40_vm0, %v361_v56  ;;  %v747_v57 = vpop.f32.mrb[2].mxu0  ;;  %v755_v58 = vpop.f32.mrb[2].mxu1 }
 0x18a   :  { %v199_v59 = vmul.f32 0.06666667, %v747_v57  ;;  %v356_v60 = vmul.f32 0.14285715, %v755_v58  ;;  %v187_v61 = vpop.f32.mrb[3].mxu0  ;;  %v344_v62 = vpop.f32.mrb[3].mxu1 }
 0x18b   :  { %v198_v0 = vmul.f32 0.06666667, %v187_v61  ;;  %v355_v1 = vmul.f32 0.14285715, %v344_v62 }
 0x18c   :  { %v360_v2 = vsub.f32 %v199_v59, %v356_v60 }
 0x18d   :  { %v359_v4 = vsub.f32 %v198_v0, %v355_v1 }
 0x18e   :  { %v364_v5 = vadd.f32 %v360_v2, %v51_v63 }
 0x18f   :  { %v363_v6 = vadd.f32 %v359_v4, %v50_v3  ;;  %v638_v13 = vld [vmem:[#allocation2 + $0x8] sm:$0xff] }
 0x190   :  { %368 = vst.msk [vmem:[#allocation2 + $0x18] sm:$0xff] %vm40_vm0, %v364_v5  ;;  %v637_v17 = vld [vmem:[#allocation2] sm:$0xff] }
 0x191   :  { %367 = vst.msk [vmem:[#allocation2 + $0x10] sm:$0xff] %vm40_vm0, %v363_v6 }
 0x197   :  { %v640_v31 = vld [vmem:[#allocation2 + $0x18] sm:$0xff] }
 0x198   :  { %v768_v7 = vpop.f32.mrb[4].mxu0  ;;  %v639_v35 = vld [vmem:[#allocation2 + $0x10] sm:$0xff] }
 0x199   :  { %v618_v8 = vpop.f32.mrb[5].mxu0  ;;  %v650_v12 = vmul.f32 0.017857144, %v768_v7 }
 0x19a   :  { %v649_v15 = vmul.f32 0.017857144, %v618_v8 }
 0x19b   :  { %v760_v9 = vpop.f32.mrb[4].mxu1 }
 0x19c   :  { %v642_v10 = vmul.f32 0.004166667, %v760_v9  ;;  %v486_v11 = vpop.f32.mrb[5].mxu1 }
 0x19d   :  { %v641_v14 = vmul.f32 0.004166667, %v486_v11 }
 0x19e   :  { %v646_v16 = vsub.f32 %v638_v13, %v642_v10 }
 0x19f   :  { %v645_v18 = vsub.f32 %v637_v17, %v641_v14 }
 0x1a0   :  { %v654_v19 = vadd.f32 %v650_v12, %v646_v16  ;;  %v771_v20 = vpop.f32.mrb[6].mxu0 }
 0x1a1   :  { %v653_v21 = vadd.f32 %v649_v15, %v645_v18  ;;  %v628_v22 = vpop.f32.mrb[7].mxu0  ;;  %v652_v29 = vmul.f32 0.017857144, %v771_v20 }
 0x1a2   :  { %v658_v23 = vmul.f32 %v654_v19, %v654_v19  ;;  %v651_v33 = vmul.f32 0.017857144, %v628_v22 }
 0x1a3   :  { %v657_v24 = vmul.f32 %v653_v21, %v653_v21  ;;  %v763_v25 = vpop.f32.mrb[6].mxu1 }
 0x1a4   :  { %v662_v26 = vsel %vm40_vm0, %v658_v23, 0.0  ;;  %v644_v27 = vmul.f32 0.004166667, %v763_v25  ;;  %v496_v28 = vpop.f32.mrb[7].mxu1 }
 0x1a5   :  { %v661_v30 = vsel %vm40_vm0, %v657_v24, 0.0  ;;  %v643_v32 = vmul.f32 0.004166667, %v496_v28 }
 0x1a6   :  { %v648_v34 = vsub.f32 %v640_v31, %v644_v27  ;;  %v663_v36 = vadd.f32 %v662_v26, %v661_v30 }
 0x1a7   :  { %v647_v37 = vsub.f32 %v639_v35, %v643_v32 }
 0x1a8   :  { %v656_v38 = vadd.f32 %v652_v29, %v648_v34 }
 0x1a9   :  { %v655_v39 = vadd.f32 %v651_v33, %v647_v37 }
 0x1aa   :  { %v660_v40 = vmul.f32 %v656_v38, %v656_v38 }
 0x1ab   :  { %v659_v41 = vmul.f32 %v655_v39, %v655_v39 }
 0x1ac   :  { %v666_v44 = vsel %vm40_vm0, %v660_v40, 0.0 }
 0x1ad   :  { %v664_v42 = vsel %vm40_vm0, %v659_v41, 0.0 }
 0x1ae   :  { %v665_v43 = vadd.f32 %v664_v42, %v663_v36 }
 0x1b0   :  { %v667_v45 = vadd.f32 %v666_v44, %v665_v43 }
 0x1b2   :  { %668 = vadd.xlane.f32.xlu0 %v667_v45 }
 0x23f   :  { %v669_v46 = vpop.xlane.xlu0 %668 }
 0x240   :  { %v670_v47 = vrot.slane %v669_v46, 4 }
 0x242   :  { %v671_v48 = vadd.f32 %v670_v47, %v669_v46 }
 0x244   :  { %v672_v49 = vrot.slane %v671_v48, 2 }
 0x246   :  { %v673_v50 = vadd.f32 %v672_v49, %v671_v48 }
 0x248   :  { %v674_v51 = vrot.slane %v673_v50, 1 }
 0x24a   :  { %v675_v52 = vadd.f32 %v674_v51, %v673_v50 }
 0x24c   :  { %776 = vpush %v675_v52 }
 0x27d   :  { %s777_s8 = spop %776 }
 0x27e   :  { %s679_s9 = smul.f32 0.00024414063, %s777_s8 }
 0x280   :  { %v680_v53 = vstv %s679_s9 }
 0x281   :  { %682 = vst.msk [vmem:[#allocation10] sm:$0x1] %vm681_vm5, %v680_v53 }
 0x282   :  { %839 = shalt.err (!%p836_p6)
}
 0x283   :  { %s840_s14 = scalar_lea.hbm %s942_s2, 16 }
 0x284   :  { %p841_p7 = scmp.ne.s32.totalorder %s942_s2, %s840_s14  ;;  %p844_p8 = scmp.lt.u32.totalorder %s840_s14, %s942_s2 }
 0x286   :  { %p846_p9 = pnand %p844_p8, %p841_p7 }
 0x288   :  { %849 = shalt.err (!%p846_p9)
}
 0x289   :  { %692 = dma.vmem_to_hbm [thread:$0]  %s690_s7, 16, %s942_s2, [#allocation7]  }
 0x28a   :  { %854 = dma.done.wait [#allocation7], 16  }
 0x28b   :  { %855 = vsyncadd [#allocation7], 4294967280 }
 0x28c   :  { %696 = vsyncpa [#allocation6], 1 }
 0x28d   :  { %697 = vsyncpa [#allocation9], 1 }
 0x28e   :  { %698 = vsyncpa [#allocation7], 1 }

</bundles_post_ra>
